<compile_context>
chip_gen: v6e
topology: v6e:2x2x1
jax: 0.10.0
libtpu: 0.0.40
codegen_flags: <defaults>
</compile_context>

<pallas_src>
import functools

import jax
import jax.numpy as jnp
from jax.experimental import pallas as pl
from jax.experimental.pallas import tpu as pltpu


def _cdiv(a, b):
    return -(-a // b)


def _round_up(a, m):
    return _cdiv(a, m) * m


def _dice_partial_kernel(p_ref, t_ref, inter_ref, union_ref,
                         inter_acc, union_acc, *, hw, tile, needs_mask):
    """Per batch-group, per-class partial sums.

    p_ref, t_ref : (Bt, C, tile) block of preds / targets (native dtype)
    inter_ref    : (C, 1) output -> sum(p * t) over this group's batches/pixels
    union_ref    : (C, 1) output -> sum(p + t) over this group's batches/pixels
    inter_acc, union_acc : (C, tile) f32 lane-wide running sums (VMEM scratch)
    """
    j = pl.program_id(1)

    @pl.when(j == 0)
    def _():
        inter_acc[...] = jnp.zeros_like(inter_acc)
        union_acc[...] = jnp.zeros_like(union_acc)

    p = p_ref[...].astype(jnp.float32)
    t = t_ref[...].astype(jnp.float32)

    if needs_mask:
        # Inputs are NOT padded in HBM; the out-of-range tail of the final
        # partial tile holds unspecified data and must be zeroed before use.
        lane = jax.lax.broadcasted_iota(jnp.int32, p.shape, dimension=p.ndim - 1)
        valid = hw - j * tile            # >= tile for every block but the last
        m = lane < valid
        p = jnp.where(m, p, 0.0)
        t = jnp.where(m, t, 0.0)

    # Pure VPU elementwise accumulation; the Bt axis is reduced on the fly.
    inter_acc[...] += jnp.sum(p * t, axis=0)
    union_acc[...] += jnp.sum(p + t, axis=0)

    # Single cross-lane (XLU) reduction per batch group, epilogue only.
    @pl.when(j == pl.num_programs(1) - 1)
    def _():
        inter_ref[...] = jnp.sum(inter_acc[...], axis=1, keepdims=True)
        union_ref[...] = jnp.sum(union_acc[...], axis=1, keepdims=True)


def _sublane_rows(c, itemsize):
    """Rows a (c, lanes) VMEM buffer really occupies after sublane padding
    (f32 pads to 8 rows, bf16 to 16, int8/fp8 to 32)."""
    mult = 8 * max(1, 4 // max(itemsize, 1))
    return _round_up(c, mult)


def _choose_blocks(B, C, HW, p_isz, t_isz,
                   target_step_bytes, max_tile, vmem_budget):
    """Pick (lane tile, n_steps, batch-group size Bt).

    Each grid step should move >= ~target_step_bytes of input from HBM (to
    amortize the ~0.35 us fixed per-step pipeline overhead), while the
    double-buffered inputs + two f32 lane-wide accumulators stay inside a
    conservative VMEM budget (safe for v5e's 16 MiB scoped default and v7x's
    64 MiB VMEM), accounting for sublane padding when C is small.
    """
    # VMEM bytes per lane of tile (per batch element for the inputs).
    in_per_lane = 2 * (_sublane_rows(C, p_isz) * p_isz      # double-buffered preds
                       + _sublane_rows(C, t_isz) * t_isz)   # double-buffered targets
    acc_per_lane = 2 * _sublane_rows(C, 4) * 4               # f32 accumulators

    vmem_cap = max(128, vmem_budget // max(in_per_lane + acc_per_lane, 1))
    desired = max(128, _cdiv(target_step_bytes, max(C * (p_isz + t_isz), 1)))
    tile_cap = max(128, (min(max_tile, vmem_cap, desired) // 128) * 128)

    if HW <= tile_cap:
        tile, n_steps = HW, 1            # full-extent lane block; no masking
    else:
        n_steps = _cdiv(HW, tile_cap)
        tile = _round_up(_cdiv(HW, n_steps), 128)   # balanced, 128-aligned
        n_steps = _cdiv(HW, tile)

    # Group several batch elements per step when one image gives too-small
    # steps (small-HW / large-B regime). Bt must divide B.
    step_bytes = C * tile * (p_isz + t_isz)
    bt_want = max(1, _cdiv(target_step_bytes, max(step_bytes, 1)))
    bt_vmem = max(1, (vmem_budget - acc_per_lane * tile)
                  // max(in_per_lane * tile, 1))
    bt_cap = int(min(B, bt_want, bt_vmem))
    bt = 1
    for d in range(1, bt_cap + 1):
        if B % d == 0:
            bt = d
    return tile, n_steps, bt


def dice_loss(preds, targets, smooth=1e-6, *,
              target_step_bytes=2 * 1024 * 1024,
              max_tile=65536,
              vmem_budget=12 * 1024 * 1024):
    """preds: [B, C, H, W]; targets: [B, C, H, W] (one-hot), any float dtype."""
    B, C, H, W = preds.shape
    assert targets.shape == preds.shape, "targets must be one-hot [B, C, H, W]"
    HW = H * W

    # Free, contiguous reshape -- no transpose, no dtype cast, no pad in HBM.
    p = preds.reshape(B, C, HW)
    t = targets.reshape(B, C, HW)

    tile, n_steps, bt = _choose_blocks(
        B, C, HW, p.dtype.itemsize, t.dtype.itemsize,
        target_step_bytes, max_tile, vmem_budget)
    G = B // bt
    needs_mask = (HW % tile) != 0

    kernel = functools.partial(
        _dice_partial_kernel, hw=HW, tile=tile, needs_mask=needs_mask)

    in_spec = pl.BlockSpec((bt, C, tile), lambda g, j: (g, 0, j))
    out_spec = pl.BlockSpec((None, C, 1), lambda g, j: (g, 0, 0))

    inter_g, union_g = pl.pallas_call(
        kernel,
        out_shape=(
            jax.ShapeDtypeStruct((G, C, 1), jnp.float32),
            jax.ShapeDtypeStruct((G, C, 1), jnp.float32),
        ),
        grid_spec=pltpu.PrefetchScalarGridSpec(
            num_scalar_prefetch=0,
            grid=(G, n_steps),
            in_specs=[in_spec, in_spec],
            out_specs=[out_spec, out_spec],
            scratch_shapes=[
                pltpu.VMEM((C, tile), jnp.float32),
                pltpu.VMEM((C, tile), jnp.float32),
            ],
        ),
        compiler_params=pltpu.CompilerParams(
            dimension_semantics=("parallel", "arbitrary"),
            vmem_limit_bytes=32 * 1024 * 1024,
        ),
    )(p, t)

    # Tiny scalar epilogue in plain JAX: combine per-group partials.
    inter = jnp.sum(inter_g[:, :, 0], axis=0)   # [C]
    union = jnp.sum(union_g[:, :, 0], axis=0)   # [C]
    dice = (2.0 * inter + smooth) / (union + smooth)
    return 1.0 - jnp.mean(dice)


def dice_loss_ref(preds, targets, smooth=1e-6):
    dims = (0, 2, 3)
    preds = preds.astype(jnp.float32)
    targets = targets.astype(jnp.float32)
    intersection = jnp.sum(preds * targets, axis=dims)
    union = jnp.sum(preds, axis=dims) + jnp.sum(targets, axis=dims)
    dice = (2.0 * intersection + smooth) / (union + smooth)
    return 1.0 - jnp.mean(dice)


if __name__ == "__main__":
    key = jax.random.PRNGKey(0)
    k1, k2, k3, k4 = jax.random.split(key, 4)

    # Case 1: small aligned shape (single full-extent tile, batch-grouped).
    B, C, H, W = 2, 4, 16, 16
    logits = jax.random.normal(k1, (B, C, H, W), dtype=jnp.float32)
    preds = jax.nn.softmax(logits, axis=1)
    # targets: one-hot of integer labels in {0..C-1}, laid out as [B, C, H, W]
    # TODO(synk): 3-D integer-label targets from the docstring are not
    # supported -- the original torch code itself requires 4-D targets.
    labels = jax.random.randint(k2, (B, H, W), 0, C)
    targets = jnp.transpose(
        jax.nn.one_hot(labels, C, dtype=jnp.float32), (0, 3, 1, 2))

    loss = jax.block_until_ready(dice_loss(preds, targets))
    loss_ref = jax.block_until_ready(dice_loss_ref(preds, targets))
    assert jnp.allclose(loss, loss_ref, atol=1e-5, rtol=1e-5), (loss, loss_ref)

    # Case 2: ragged spatial size with a tiny max_tile to exercise the
    # multi-step + masked-final-tile path (no jnp.pad / HBM copy).
    B2, C2, H2, W2 = 2, 4, 17, 19
    logits2 = jax.random.normal(k3, (B2, C2, H2, W2), dtype=jnp.float32)
    preds2 = jax.nn.softmax(logits2, axis=1)
    labels2 = jax.random.randint(k4, (B2, H2, W2), 0, C2)
    targets2 = jnp.transpose(
        jax.nn.one_hot(labels2, C2, dtype=jnp.float32), (0, 3, 1, 2))

    loss2 = jax.block_until_ready(dice_loss(preds2, targets2, max_tile=128))
    loss2_ref = jax.block_until_ready(dice_loss_ref(preds2, targets2))
    assert jnp.allclose(loss2, loss2_ref, atol=1e-5, rtol=1e-5), (loss2, loss2_ref)

    print("KERNEL_OK")
</pallas_src>

<mosaic_0001>
module attributes {stable_mosaic.version = 11 : i64} {
  func.func @_dice_partial_kernel(%arg0: i32, %arg1: i32, %arg2: memref<2x4x256xf32, #tpu.memory_space<vmem>>, %arg3: memref<2x4x256xf32, #tpu.memory_space<vmem>>, %arg4: memref<1x4x1xf32, #tpu.memory_space<vmem>>, %arg5: memref<1x4x1xf32, #tpu.memory_space<vmem>>, %arg6: memref<4x256xf32, #tpu.memory_space<vmem>>, %arg7: memref<4x256xf32, #tpu.memory_space<vmem>>) attributes {dimension_semantics = [#tpu.dimension_semantics<parallel>, #tpu.dimension_semantics<arbitrary>], iteration_bounds = array<i64: 1, 1>, scalar_prefetch = 0 : i64, scratch_operands = 2 : i64, tpu.core_type = #tpu.core_type<tc>, window_params = [{transform_indices = @transform_0, window_bounds = array<i64: 2, 4, 256>}, {transform_indices = @transform_1, window_bounds = array<i64: 2, 4, 256>}, {transform_indices = @transform_2, window_bounds = array<i64: 1, 4, 1>}, {transform_indices = @transform_3, window_bounds = array<i64: 1, 4, 1>}]} {
    %c0_i32 = arith.constant 0 : i32
    %0 = arith.cmpi eq, %arg1, %c0_i32 : i32
    %1 = arith.extui %0 : i1 to i32
    %c0_i32_0 = arith.constant 0 : i32
    %2 = arith.cmpi ne, %1, %c0_i32_0 : i32
    scf.if %2 {
      %cst_17 = arith.constant 0.000000e+00 : f32
      %18 = vector.broadcast %cst_17 : f32 to vector<4x256xf32>
      %c0_18 = arith.constant 0 : index
      %c0_19 = arith.constant 0 : index
      %19 = vector.load %arg6[%c0_18, %c0_19] : memref<4x256xf32, #tpu.memory_space<vmem>>, vector<4x256xf32>
      tpu.vector_store %arg6[%c0_18, %c0_19], %18 {strides = array<i32>} : memref<4x256xf32, #tpu.memory_space<vmem>>, vector<4x256xf32>,
      %cst_20 = arith.constant 0.000000e+00 : f32
      %20 = vector.broadcast %cst_20 : f32 to vector<4x256xf32>
      %c0_21 = arith.constant 0 : index
      %c0_22 = arith.constant 0 : index
      %21 = vector.load %arg7[%c0_21, %c0_22] : memref<4x256xf32, #tpu.memory_space<vmem>>, vector<4x256xf32>
      tpu.vector_store %arg7[%c0_21, %c0_22], %20 {strides = array<i32>} : memref<4x256xf32, #tpu.memory_space<vmem>>, vector<4x256xf32>,
    } else {
    }
    %c0 = arith.constant 0 : index
    %c0_1 = arith.constant 0 : index
    %c0_2 = arith.constant 0 : index
    %3 = vector.load %arg2[%c0, %c0_1, %c0_2] : memref<2x4x256xf32, #tpu.memory_space<vmem>>, vector<2x4x256xf32>
    %c0_3 = arith.constant 0 : index
    %c0_4 = arith.constant 0 : index
    %c0_5 = arith.constant 0 : index
    %4 = vector.load %arg3[%c0_3, %c0_4, %c0_5] : memref<2x4x256xf32, #tpu.memory_space<vmem>>, vector<2x4x256xf32>
    %c0_6 = arith.constant 0 : index
    %c0_7 = arith.constant 0 : index
    %5 = vector.load %arg6[%c0_6, %c0_7] : memref<4x256xf32, #tpu.memory_space<vmem>>, vector<4x256xf32>
    %6 = arith.mulf %3, %4 : vector<2x4x256xf32>
    %cst = arith.constant dense<0.000000e+00> : vector<4x256xf32>
    %7 = vector.multi_reduction <add>, %6, %cst [0] : vector<2x4x256xf32> to vector<4x256xf32>
    %8 = arith.addf %5, %7 : vector<4x256xf32>
    %c0_8 = arith.constant 0 : index
    %c0_9 = arith.constant 0 : index
    %9 = vector.load %arg6[%c0_8, %c0_9] : memref<4x256xf32, #tpu.memory_space<vmem>>, vector<4x256xf32>
    tpu.vector_store %arg6[%c0_8, %c0_9], %8 {strides = array<i32>} : memref<4x256xf32, #tpu.memory_space<vmem>>, vector<4x256xf32>,
    %c0_10 = arith.constant 0 : index
    %c0_11 = arith.constant 0 : index
    %10 = vector.load %arg7[%c0_10, %c0_11] : memref<4x256xf32, #tpu.memory_space<vmem>>, vector<4x256xf32>
    %11 = arith.addf %3, %4 : vector<2x4x256xf32>
    %cst_12 = arith.constant dense<0.000000e+00> : vector<4x256xf32>
    %12 = vector.multi_reduction <add>, %11, %cst_12 [0] : vector<2x4x256xf32> to vector<4x256xf32>
    %13 = arith.addf %10, %12 : vector<4x256xf32>
    %c0_13 = arith.constant 0 : index
    %c0_14 = arith.constant 0 : index
    %14 = vector.load %arg7[%c0_13, %c0_14] : memref<4x256xf32, #tpu.memory_space<vmem>>, vector<4x256xf32>
    tpu.vector_store %arg7[%c0_13, %c0_14], %13 {strides = array<i32>} : memref<4x256xf32, #tpu.memory_space<vmem>>, vector<4x256xf32>,
    %c0_i32_15 = arith.constant 0 : i32
    %15 = arith.cmpi eq, %arg1, %c0_i32_15 : i32
    %16 = arith.extui %15 : i1 to i32
    %c0_i32_16 = arith.constant 0 : i32
    %17 = arith.cmpi ne, %16, %c0_i32_16 : i32
    scf.if %17 {
      %c0_17 = arith.constant 0 : index
      %c0_18 = arith.constant 0 : index
      %18 = vector.load %arg6[%c0_17, %c0_18] : memref<4x256xf32, #tpu.memory_space<vmem>>, vector<4x256xf32>
      %cst_19 = arith.constant dense<0.000000e+00> : vector<4xf32>
      %19 = vector.multi_reduction <add>, %18, %cst_19 [1] : vector<4x256xf32> to vector<4xf32>
      %20 = vector.shape_cast %19 : vector<4xf32> to vector<4x1xf32>
      %c0_20 = arith.constant 0 : index
      %c0_21 = arith.constant 0 : index
      %c0_22 = arith.constant 0 : index
      %21 = vector.load %arg4[%c0_20, %c0_21, %c0_22] : memref<1x4x1xf32, #tpu.memory_space<vmem>>, vector<1x4x1xf32>
      %22 = vector.shape_cast %21 : vector<1x4x1xf32> to vector<4x1xf32>
      %23 = vector.shape_cast %20 : vector<4x1xf32> to vector<1x4x1xf32>
      tpu.vector_store %arg4[%c0_20, %c0_21, %c0_22], %23 {strides = array<i32>} : memref<1x4x1xf32, #tpu.memory_space<vmem>>, vector<1x4x1xf32>,
      %c0_23 = arith.constant 0 : index
      %c0_24 = arith.constant 0 : index
      %24 = vector.load %arg7[%c0_23, %c0_24] : memref<4x256xf32, #tpu.memory_space<vmem>>, vector<4x256xf32>
      %cst_25 = arith.constant dense<0.000000e+00> : vector<4xf32>
      %25 = vector.multi_reduction <add>, %24, %cst_25 [1] : vector<4x256xf32> to vector<4xf32>
      %26 = vector.shape_cast %25 : vector<4xf32> to vector<4x1xf32>
      %c0_26 = arith.constant 0 : index
      %c0_27 = arith.constant 0 : index
      %c0_28 = arith.constant 0 : index
      %27 = vector.load %arg5[%c0_26, %c0_27, %c0_28] : memref<1x4x1xf32, #tpu.memory_space<vmem>>, vector<1x4x1xf32>
      %28 = vector.shape_cast %27 : vector<1x4x1xf32> to vector<4x1xf32>
      %29 = vector.shape_cast %26 : vector<4x1xf32> to vector<1x4x1xf32>
      tpu.vector_store %arg5[%c0_26, %c0_27, %c0_28], %29 {strides = array<i32>} : memref<1x4x1xf32, #tpu.memory_space<vmem>>, vector<1x4x1xf32>,
    } else {
    }
    return
  }
  func.func @transform_0(%arg0: i32, %arg1: i32) -> (i32, i32, i32) {
    %c0_i32 = arith.constant 0 : i32
    %c0_i32_0 = arith.constant 0 : i32
    return %arg0, %c0_i32, %arg1 : i32, i32, i32
  }
  func.func @transform_1(%arg0: i32, %arg1: i32) -> (i32, i32, i32) {
    %c0_i32 = arith.constant 0 : i32
    %c0_i32_0 = arith.constant 0 : i32
    return %arg0, %c0_i32, %arg1 : i32, i32, i32
  }
  func.func @transform_2(%arg0: i32, %arg1: i32) -> (i32, i32, i32) {
    %c0_i32 = arith.constant 0 : i32
    %c0_i32_0 = arith.constant 0 : i32
    %c0_i32_1 = arith.constant 0 : i32
    return %arg0, %c0_i32, %c0_i32_0 : i32, i32, i32
  }
  func.func @transform_3(%arg0: i32, %arg1: i32) -> (i32, i32, i32) {
    %c0_i32 = arith.constant 0 : i32
    %c0_i32_0 = arith.constant 0 : i32
    %c0_i32_1 = arith.constant 0 : i32
    return %arg0, %c0_i32, %c0_i32_0 : i32, i32, i32
  }
}

</mosaic_0001>

<bundles_post_ra>
// kernel: tpu_custom_call.1
= control target key start
LH: loop header
LB: loop body
LE: loop exit
PB: predicated region body
PF: predicated region fallthrough
CT: control target
= control target key end

     0   :  { %9 = vsyncpa [#allocation5], 0  ;;  %s226_s0 = inlined_call_operand.hbm [shape: f32[2,4,256], index: 0, kind: input, shape index: {}]   ;;  %s227_s1 = inlined_call_operand.hbm [shape: f32[2,4,256], index: 1, kind: input, shape index: {}]   ;;  %s228_s2 = inlined_call_operand.vmem [shape: f32[1,4,1], index: 2, kind: output, shape index: {0}]   ;;  %s229_s3 = inlined_call_operand.vmem [shape: f32[1,4,1], index: 3, kind: output, shape index: {1}]  }
   0x1   :  { %10 = vsyncpa [#allocation7], 0  ;;  %s178_s12 = smov [#allocation4]  }
   0x2   :  { %s16_s13 = sshll.u32 %s178_s12, 4  ;;  %s17_s13 = int_to_ptr.vmem [resolvable:$true] %s16_s13 }
   0x3   :  { %s142_s14 = scalar_lea.vmem %s17_s13, 256  ;;  %p147_p1 = scmp.lt.s32.totalorder %s17_s13, %s17_s13 }
   0x4   :  { %p143_p0 = scmp.ne.s32.totalorder %s17_s13, %s142_s14  ;;  %p148_p2 = scmp.lt.s32.totalorder %s142_s14, %s142_s14 }
   0x6   :  { %p149_p3 = por %p148_p2, %p147_p1 }
   0x8   :  { %p150_p4 = pnand %p149_p3, %p143_p0 }
   0xa   :  { %153 = shalt.err (!%p150_p4)
}
   0xb   :  { %s179_s15 = smov 128   ;;  %s180_s16 = smov 8  }
   0xc   :  { %22 = dma.hbm_to_vmem [thread:$0]  %s226_s0, 256, %s17_s13, [#allocation5], %s179_s15, %s179_s15, %s180_s16  }
   0xd   :  { %s181_s19 = smov [#allocation6]  }
   0xe   :  { %s28_s20 = sshll.u32 %s181_s19, 4  ;;  %s29_s20 = int_to_ptr.vmem [resolvable:$true] %s28_s20 }
   0xf   :  { %s162_s21 = scalar_lea.vmem %s29_s20, 256  ;;  %p167_p6 = scmp.lt.s32.totalorder %s29_s20, %s29_s20 }
  0x10   :  { %p163_p5 = scmp.ne.s32.totalorder %s29_s20, %s162_s21  ;;  %p168_p7 = scmp.lt.s32.totalorder %s162_s21, %s162_s21 }
  0x12   :  { %p169_p8 = por %p168_p7, %p167_p6 }
  0x14   :  { %p170_p9 = pnand %p169_p8, %p163_p5 }
  0x16   :  { %173 = shalt.err (!%p170_p9)
}
  0x17   :  { %34 = dma.hbm_to_vmem [thread:$0]  %s227_s1, 256, %s29_s20, [#allocation7], %s179_s15, %s179_s15, %s180_s16  }
  0x18   :  { %174 = dma.done.wait [#allocation5], 256  }
  0x19   :  { %175 = vsyncadd [#allocation5], 4294967040 }
  0x1a   :  { %176 = dma.done.wait [#allocation7], 256  }
  0x1b   :  { %177 = vsyncadd [#allocation7], 4294967040  ;;  %v47_v0 = vld [vmem:[#allocation4] sm:$0xff]  ;;  %v48_v1 = vld [vmem:[#allocation4 + $0x8] sm:$0xff]  ;;  %vm60_vm0 = vcmask 1043456   ;;  %vm106_vm1 = vcmask 3072  }
  0x1c   :  { %v49_v2 = vld [vmem:[#allocation6] sm:$0xff]  ;;  %v50_v3 = vld [vmem:[#allocation6 + $0x8] sm:$0xff] }
  0x1d   :  { %v52_v4 = vmul.f32 %v49_v2, %v47_v0  ;;  %v74_v5 = vadd.f32 %v49_v2, %v47_v0  ;;  %v53_v6 = vmul.f32 %v50_v3, %v48_v1  ;;  %v75_v7 = vadd.f32 %v50_v3, %v48_v1 }
  0x1f   :  { %v56_v8 = vcombine.high %v52_v4, %v52_v4  ;;  %v61_v9 = vsel %vm60_vm0, %v52_v4, 0.0  ;;  %v78_v10 = vcombine.high %v74_v5, %v74_v5  ;;  %v82_v11 = vsel %vm60_vm0, %v74_v5, 0.0 }
  0x20   :  { %v57_v12 = vcombine.high %v53_v6, %v53_v6  ;;  %v62_v13 = vsel %vm60_vm0, %v53_v6, 0.0  ;;  %v79_v14 = vcombine.high %v75_v7, %v75_v7  ;;  %v83_v15 = vsel %vm60_vm0, %v75_v7, 0.0 }
  0x21   :  { %v63_v16 = vadd.f32 %v62_v13, %v61_v9  ;;  %v64_v17 = vsel %vm60_vm0, %v56_v8, 0.0  ;;  %v84_v18 = vadd.f32 %v83_v15, %v82_v11  ;;  %v85_v19 = vsel %vm60_vm0, %v78_v10, 0.0 }
  0x22   :  { %v65_v20 = vsel %vm60_vm0, %v57_v12, 0.0  ;;  %v86_v21 = vsel %vm60_vm0, %v79_v14, 0.0 }
  0x23   :  { %v66_v22 = vadd.f32 %v65_v20, %v64_v17  ;;  %v87_v23 = vadd.f32 %v86_v21, %v85_v19 }
  0x25   :  { %v69_v24 = vcombine.low %v63_v16, %v66_v22  ;;  %v128_v25 = vcombine.low %v66_v22, %v66_v22  ;;  %v90_v26 = vcombine.low %v84_v18, %v87_v23  ;;  %v129_v27 = vcombine.low %v87_v23, %v87_v23 }
  0x27   :  { %v101_v28 = vsel %vm60_vm0, %v69_v24, 0.0  ;;  %v102_v29 = vsel %vm60_vm0, %v128_v25, 0.0  ;;  %v112_v30 = vsel %vm60_vm0, %v90_v26, 0.0  ;;  %v113_v31 = vsel %vm60_vm0, %v129_v27, 0.0 }
  0x28   :  { %v103_v32 = vadd.f32 %v102_v29, %v101_v28  ;;  %v114_v33 = vadd.f32 %v113_v31, %v112_v30 }
  0x2a   :  { %104 = vadd.xlane.f32.xlu0 %v103_v32 }
  0x2e   :  { %115 = vadd.xlane.f32.xlu0 %v114_v33 }
  0xb3   :  { %v105_v34 = vpop.xlane.xlu0 %104 }
  0xb4   :  { %107 = vst.msk [vmem:[%s228_s2] sm:$0xf] %vm106_vm1, %v105_v34 }
  0xb7   :  { %v116_v35 = vpop.xlane.xlu0 %115 }
  0xb8   :  { %117 = vst.msk [vmem:[%s229_s3] sm:$0xf] %vm106_vm1, %v116_v35 }
  0xb9   :  { %126 = vsyncpa [#allocation5], 1 }
  0xba   :  { %127 = vsyncpa [#allocation7], 1 }

</bundles_post_ra>
